<compile_context>
chip_gen: v6e
topology: v6e:2x2x1
jax: 0.10.0
libtpu: 0.0.40
codegen_flags: <defaults>
</compile_context>

<pallas_src>
import functools

import jax
import jax.numpy as jnp
from jax import lax
from jax.experimental import pallas as pl
from jax.experimental.pallas import tpu as pltpu


def _rnn_kernel(x_ref, wih_ref, whh_ref, b_ref, wfc_ref, bfc_ref,
                out_ref, h_ref, xw_ref, *, fuse_proj):
    """One (batch-tile, time-tile) grid step.

    x_ref  : (T_TILE, B_TILE, I) time-major input tile (f32; cast in-kernel)
    wih_ref: (I, H)   = W_ih^T          (mxu dtype)
    whh_ref: (H, H)   = W_hh^T          (mxu dtype)
    b_ref  : (1, H)   = b_ih + b_hh     (f32)
    wfc_ref: (H, O)   = W_fc^T          (mxu dtype)
    bfc_ref: (1, O)                     (f32)
    out_ref: (B_TILE, O) written only on the last time tile
    h_ref  : (B_TILE, H) f32 scratch -- hidden state carried across time tiles
    xw_ref : (T_TILE, B_TILE, H) f32 scratch -- hoisted input projection
    """
    t_idx = pl.program_id(1)
    t_tile = x_ref.shape[0]

    @pl.when(t_idx == 0)
    def _():
        h_ref[...] = jnp.zeros_like(h_ref)

    wih = wih_ref[...]
    whh = whh_ref[...]
    b = b_ref[...]

    # ---- Hoisted input projection for this time tile (off the serial path) --
    if fuse_proj:
        # Batch tile is sublane-aligned: flatten/unflatten are free views, so
        # all T_TILE steps go through one MXU matmul.
        t, bt, i = x_ref.shape
        x2d = x_ref[...].reshape(t * bt, i).astype(wih.dtype)
        xw = jnp.dot(x2d, wih, preferred_element_type=jnp.float32)
        xw_ref[...] = xw.reshape(t, bt, wih.shape[1]) + b
    else:
        # Small / unaligned batch tile: T_TILE independent 2-D dots, each store
        # to the scratch ref bounds its live range (no big traced temp).
        for s in range(t_tile):
            xw_ref[s] = jnp.dot(x_ref[s].astype(wih.dtype), wih,
                                preferred_element_type=jnp.float32) + b

    # ---- Serial recurrence: h_s = tanh(xw_s + h_{s-1} @ W_hh^T) -------------
    def step(s, h):
        # TODO(synk): on v6e/v7x, carrying h in bf16 removes two casts from the
        # serial chain; kept f32 for v5e safety and to avoid compounding
        # rounding over long sequences (see review correctness note).
        return jnp.tanh(xw_ref[s]
                        + jnp.dot(h.astype(whh.dtype), whh,
                                  preferred_element_type=jnp.float32))

    h = lax.fori_loop(0, t_tile, step, h_ref[...], unroll=min(t_tile, 8))
    h_ref[...] = h

    # ---- FC head + sigmoid on the final hidden state ------------------------
    @pl.when(t_idx == pl.num_programs(1) - 1)
    def _():
        logits = jnp.dot(h.astype(wfc_ref.dtype), wfc_ref[...],
                         preferred_element_type=jnp.float32) + bfc_ref[...]
        out_ref[...] = jax.nn.sigmoid(logits).astype(out_ref.dtype)


def _largest_divisor(n, cap, align=1):
    """Largest divisor of n that is <= cap and a multiple of align (fallback n)."""
    for d in range(min(cap, n), 0, -1):
        if n % d == 0 and d % align == 0:
            return d
    return n


def _vmem_limit_bytes(b_tile, t_tile, input_size, hidden, out_size, mxu_itemsize):
    f32 = 4
    x_tiles = 2 * t_tile * b_tile * input_size * f32           # double-buffered x
    weights = 2 * (input_size * hidden + hidden * hidden
                   + hidden * out_size) * mxu_itemsize          # constant blocks
    biases = 2 * (hidden + out_size) * f32
    out_tiles = 2 * b_tile * out_size * f32
    scratch = (b_tile * hidden + t_tile * b_tile * hidden) * f32
    total = x_tiles + weights + biases + out_tiles + scratch
    # 1.5x for (8,128) padding + compiler internals, 4 MiB headroom,
    # floored at 16 MiB (tiny-shape padding) and capped at 64 MiB (v7x VMEM/TC).
    return min(64 << 20, max(16 << 20, int(total * 1.5) + (4 << 20)))


def base_rnn_forward(x, params, *, mxu_dtype=jnp.float32, b_tile=None, t_tile=None):
    """x: (B, T, I) batch-first f32.  Returns (B, O) f32.

    mxu_dtype=jnp.bfloat16 halves weight bytes / VMEM residency and uses the
    native bf16 MXU path on v5e/v6e/v7x; accumulation, the hidden state, and
    all elementwise math (tanh / sigmoid / bias adds) stay f32.
    """
    B, T, I = x.shape
    H = params["w_hh_t"].shape[0]
    O = params["w_fc_t"].shape[1]

    # ---- tile sizing ---------------------------------------------------------
    if b_tile is None:
        if B % 8 == 0 and B > 8:
            b_tile = _largest_divisor(B, cap=256, align=8)
        else:
            b_tile = B
    if t_tile is None:
        t_tile = _largest_divisor(T, cap=32)
    assert B % b_tile == 0 and T % t_tile == 0
    assert b_tile == B or b_tile % 8 == 0, (
        "batch tile must be the full batch or sublane-aligned (multiple of 8)")
    # Single fused projection matmul only when the in-kernel flatten is a view.
    fuse_proj = (b_tile % 8 == 0)

    # ---- wrapper-side layout plumbing & one-time weight casts ----------------
    # Time-major x so the kernel indexes timesteps along the leading (untiled)
    # axis of both the input tile and the xw scratch (no in-kernel transposes
    # or dynamic sublane slicing).  x itself stays f32 (cast happens in-kernel).
    x_tm = jnp.swapaxes(x, 0, 1).astype(jnp.float32)            # (T, B, I)
    wih = params["w_ih_t"].astype(mxu_dtype)
    whh = params["w_hh_t"].astype(mxu_dtype)
    wfc = params["w_fc_t"].astype(mxu_dtype)
    b = (params["b_ih"] + params["b_hh"]).astype(jnp.float32)   # folded bias
    bfc = params["b_fc"].astype(jnp.float32)

    grid = (B // b_tile, T // t_tile)
    const = lambda bi, ti: (0, 0)
    in_specs = [
        pl.BlockSpec((t_tile, b_tile, I), lambda bi, ti: (ti, bi, 0)),  # x
        pl.BlockSpec((I, H), const),                                    # W_ih^T
        pl.BlockSpec((H, H), const),                                    # W_hh^T
        pl.BlockSpec((1, H), const),                                    # b_ih+b_hh
        pl.BlockSpec((H, O), const),                                    # W_fc^T
        pl.BlockSpec((1, O), const),                                    # b_fc
    ]
    out_specs = pl.BlockSpec((b_tile, O), lambda bi, ti: (bi, 0))
    scratch_shapes = [
        pltpu.VMEM((b_tile, H), jnp.float32),            # carried hidden state
        pltpu.VMEM((t_tile, b_tile, H), jnp.float32),    # hoisted projection
    ]

    vmem_limit = _vmem_limit_bytes(b_tile, t_tile, I, H, O,
                                   jnp.dtype(mxu_dtype).itemsize)

    return pl.pallas_call(
        functools.partial(_rnn_kernel, fuse_proj=fuse_proj),
        out_shape=jax.ShapeDtypeStruct((B, O), jnp.float32),
        grid=grid,
        in_specs=in_specs,
        out_specs=out_specs,
        scratch_shapes=scratch_shapes,
        compiler_params=pltpu.CompilerParams(
            dimension_semantics=("parallel", "arbitrary"),
            vmem_limit_bytes=vmem_limit),
    )(x_tm, wih, whh, b, wfc, bfc)


def init_params(key, input_size, hidden_size, output_size):
    """Deterministic init mirroring PyTorch's U(-1/sqrt(H), 1/sqrt(H)) scheme."""
    ks = jax.random.split(key, 6)
    bound = 1.0 / jnp.sqrt(jnp.float32(hidden_size))
    u = lambda k, shape: jax.random.uniform(k, shape, jnp.float32, -bound, bound)
    # Stored pre-transposed for row-major matmuls in the kernel.
    return {
        "w_ih_t": u(ks[0], (input_size, hidden_size)),    # = W_ih^T
        "w_hh_t": u(ks[1], (hidden_size, hidden_size)),   # = W_hh^T
        "b_ih":   u(ks[2], (1, hidden_size)),
        "b_hh":   u(ks[3], (1, hidden_size)),
        "w_fc_t": u(ks[4], (hidden_size, output_size)),   # = W_fc^T
        "b_fc":   u(ks[5], (1, output_size)),
    }


def base_rnn_reference(x, params):
    """Pure-JAX reference of the same forward pass (for sanity checking)."""
    B, T, I = x.shape
    H = params["w_hh_t"].shape[0]
    h = jnp.zeros((B, H), jnp.float32)
    for t in range(T):
        h = jnp.tanh(x[:, t, :] @ params["w_ih_t"] + params["b_ih"]
                     + h @ params["w_hh_t"] + params["b_hh"])
    return jax.nn.sigmoid(h @ params["w_fc_t"] + params["b_fc"])


if __name__ == "__main__":
    key = jax.random.PRNGKey(0)

    # --- Config 1: module-scale shapes (B=2, T=8, I=4, H=32, O=1). -----------
    # t_tile=4 so the time grid has 2 steps and the carried-h / pl.when paths
    # are actually exercised (non-fused projection path: B=2 < sublane tile).
    B, T, I, H, O = 2, 8, 4, 32, 1
    k_x, k_p, k_x2, k_p2 = jax.random.split(key, 4)
    x = jax.random.normal(k_x, (B, T, I), jnp.float32)
    params = init_params(k_p, I, H, O)
    ref = base_rnn_reference(x, params)

    out = jax.block_until_ready(base_rnn_forward(x, params, t_tile=4))
    assert out.shape == (B, O)
    assert jnp.allclose(out, ref, atol=1e-4, rtol=1e-4), (out, ref)

    # bf16-MXU path: bf16 dot operands, f32 accumulation / hidden / elementwise.
    out_bf16 = jax.block_until_ready(
        base_rnn_forward(x, params, mxu_dtype=jnp.bfloat16, t_tile=4))
    assert out_bf16.shape == (B, O)
    assert jnp.allclose(out_bf16, ref, atol=5e-2, rtol=5e-2)

    # --- Config 2: sublane-aligned batch tile -> fused projection matmul, ----
    # 2x2 grid with a "parallel" batch axis (v7x megacore sharding path).
    B2, T2, I2, H2, O2 = 16, 8, 4, 128, 1
    x2 = jax.random.normal(k_x2, (B2, T2, I2), jnp.float32)
    params2 = init_params(k_p2, I2, H2, O2)
    ref2 = base_rnn_reference(x2, params2)

    out2 = jax.block_until_ready(
        base_rnn_forward(x2, params2, b_tile=8, t_tile=4))
    assert out2.shape == (B2, O2)
    assert jnp.allclose(out2, ref2, atol=1e-4, rtol=1e-4)

    print("KERNEL_OK")
</pallas_src>

<mosaic_0001>
module attributes {stable_mosaic.version = 11 : i64} {
  func.func @_rnn_kernel(%arg0: i32, %arg1: i32, %arg2: memref<4x2x4xf32, #tpu.memory_space<vmem>>, %arg3: memref<4x32xf32, #tpu.memory_space<vmem>>, %arg4: memref<32x32xf32, #tpu.memory_space<vmem>>, %arg5: memref<1x32xf32, #tpu.memory_space<vmem>>, %arg6: memref<32x1xf32, #tpu.memory_space<vmem>>, %arg7: memref<1x1xf32, #tpu.memory_space<vmem>>, %arg8: memref<2x1xf32, #tpu.memory_space<vmem>>, %arg9: memref<2x32xf32, #tpu.memory_space<vmem>>, %arg10: memref<4x2x32xf32, #tpu.memory_space<vmem>>) attributes {dimension_semantics = [#tpu.dimension_semantics<parallel>, #tpu.dimension_semantics<arbitrary>], iteration_bounds = array<i64: 1, 2>, scalar_prefetch = 0 : i64, scratch_operands = 2 : i64, tpu.core_type = #tpu.core_type<tc>, window_params = [{transform_indices = @transform_0, window_bounds = array<i64: 4, 2, 4>}, {pipeline_mode = #tpu.pipeline_mode<synchronous>, transform_indices = @transform_1, window_bounds = array<i64: 4, 32>}, {pipeline_mode = #tpu.pipeline_mode<synchronous>, transform_indices = @transform_2, window_bounds = array<i64: 32, 32>}, {pipeline_mode = #tpu.pipeline_mode<synchronous>, transform_indices = @transform_3, window_bounds = array<i64: 1, 32>}, {pipeline_mode = #tpu.pipeline_mode<synchronous>, transform_indices = @transform_4, window_bounds = array<i64: 32, 1>}, {pipeline_mode = #tpu.pipeline_mode<synchronous>, transform_indices = @transform_5, window_bounds = array<i64: 1, 1>}, {transform_indices = @transform_6, window_bounds = array<i64: 2, 1>}]} {
    %c0_i32 = arith.constant 0 : i32
    %0 = arith.cmpi eq, %arg1, %c0_i32 : i32
    %1 = arith.extui %0 : i1 to i32
    %c0_i32_0 = arith.constant 0 : i32
    %2 = arith.cmpi ne, %1, %c0_i32_0 : i32
    scf.if %2 {
      %cst_49 = arith.constant 0.000000e+00 : f32
      %67 = vector.broadcast %cst_49 : f32 to vector<2x32xf32>
      %c0_50 = arith.constant 0 : index
      %c0_51 = arith.constant 0 : index
      %68 = vector.load %arg9[%c0_50, %c0_51] : memref<2x32xf32, #tpu.memory_space<vmem>>, vector<2x32xf32>
      tpu.vector_store %arg9[%c0_50, %c0_51], %67 {strides = array<i32>} : memref<2x32xf32, #tpu.memory_space<vmem>>, vector<2x32xf32>,
    } else {
    }
    %c0 = arith.constant 0 : index
    %c0_1 = arith.constant 0 : index
    %3 = vector.load %arg3[%c0, %c0_1] : memref<4x32xf32, #tpu.memory_space<vmem>>, vector<4x32xf32>
    %c0_2 = arith.constant 0 : index
    %c0_3 = arith.constant 0 : index
    %4 = vector.load %arg4[%c0_2, %c0_3] : memref<32x32xf32, #tpu.memory_space<vmem>>, vector<32x32xf32>
    %c0_4 = arith.constant 0 : index
    %c0_5 = arith.constant 0 : index
    %5 = vector.load %arg5[%c0_4, %c0_5] : memref<1x32xf32, #tpu.memory_space<vmem>>, vector<1x32xf32>
    %c0_6 = arith.constant 0 : index
    %c0_7 = arith.constant 0 : index
    %c0_8 = arith.constant 0 : index
    %6 = vector.load %arg2[%c0_6, %c0_7, %c0_8] : memref<4x2x4xf32, #tpu.memory_space<vmem>>, vector<1x2x4xf32>
    %7 = vector.shape_cast %6 : vector<1x2x4xf32> to vector<2x4xf32>
    %cst = arith.constant dense<0.000000e+00> : vector<2x32xf32>
    %8 = tpu.matmul %7, %3, %cst {dimension_numbers = #tpu.dot_dimension_numbers<[1], [0], [0], [1], [0, 0, 1, 1], [], []>} : vector<2x4xf32>, vector<4x32xf32>, vector<2x32xf32> -> vector<2x32xf32>
    %9 = vector.broadcast %5 : vector<1x32xf32> to vector<2x32xf32>
    %10 = arith.addf %8, %9 : vector<2x32xf32>
    %c0_9 = arith.constant 0 : index
    %c0_10 = arith.constant 0 : index
    %c0_11 = arith.constant 0 : index
    %11 = vector.load %arg10[%c0_9, %c0_10, %c0_11] : memref<4x2x32xf32, #tpu.memory_space<vmem>>, vector<1x2x32xf32>
    %12 = vector.shape_cast %11 : vector<1x2x32xf32> to vector<2x32xf32>
    %13 = vector.shape_cast %10 : vector<2x32xf32> to vector<1x2x32xf32>
    tpu.vector_store %arg10[%c0_9, %c0_10, %c0_11], %13 {strides = array<i32>} : memref<4x2x32xf32, #tpu.memory_space<vmem>>, vector<1x2x32xf32>,
    %c1 = arith.constant 1 : index
    %c0_12 = arith.constant 0 : index
    %c0_13 = arith.constant 0 : index
    %14 = vector.load %arg2[%c1, %c0_12, %c0_13] : memref<4x2x4xf32, #tpu.memory_space<vmem>>, vector<1x2x4xf32>
    %15 = vector.shape_cast %14 : vector<1x2x4xf32> to vector<2x4xf32>
    %cst_14 = arith.constant dense<0.000000e+00> : vector<2x32xf32>
    %16 = tpu.matmul %15, %3, %cst_14 {dimension_numbers = #tpu.dot_dimension_numbers<[1], [0], [0], [1], [0, 0, 1, 1], [], []>} : vector<2x4xf32>, vector<4x32xf32>, vector<2x32xf32> -> vector<2x32xf32>
    %17 = vector.broadcast %5 : vector<1x32xf32> to vector<2x32xf32>
    %18 = arith.addf %16, %17 : vector<2x32xf32>
    %c1_15 = arith.constant 1 : index
    %c0_16 = arith.constant 0 : index
    %c0_17 = arith.constant 0 : index
    %19 = vector.load %arg10[%c1_15, %c0_16, %c0_17] : memref<4x2x32xf32, #tpu.memory_space<vmem>>, vector<1x2x32xf32>
    %20 = vector.shape_cast %19 : vector<1x2x32xf32> to vector<2x32xf32>
    %21 = vector.shape_cast %18 : vector<2x32xf32> to vector<1x2x32xf32>
    tpu.vector_store %arg10[%c1_15, %c0_16, %c0_17], %21 {strides = array<i32>} : memref<4x2x32xf32, #tpu.memory_space<vmem>>, vector<1x2x32xf32>,
    %c2 = arith.constant 2 : index
    %c0_18 = arith.constant 0 : index
    %c0_19 = arith.constant 0 : index
    %22 = vector.load %arg2[%c2, %c0_18, %c0_19] : memref<4x2x4xf32, #tpu.memory_space<vmem>>, vector<1x2x4xf32>
    %23 = vector.shape_cast %22 : vector<1x2x4xf32> to vector<2x4xf32>
    %cst_20 = arith.constant dense<0.000000e+00> : vector<2x32xf32>
    %24 = tpu.matmul %23, %3, %cst_20 {dimension_numbers = #tpu.dot_dimension_numbers<[1], [0], [0], [1], [0, 0, 1, 1], [], []>} : vector<2x4xf32>, vector<4x32xf32>, vector<2x32xf32> -> vector<2x32xf32>
    %25 = vector.broadcast %5 : vector<1x32xf32> to vector<2x32xf32>
    %26 = arith.addf %24, %25 : vector<2x32xf32>
    %c2_21 = arith.constant 2 : index
    %c0_22 = arith.constant 0 : index
    %c0_23 = arith.constant 0 : index
    %27 = vector.load %arg10[%c2_21, %c0_22, %c0_23] : memref<4x2x32xf32, #tpu.memory_space<vmem>>, vector<1x2x32xf32>
    %28 = vector.shape_cast %27 : vector<1x2x32xf32> to vector<2x32xf32>
    %29 = vector.shape_cast %26 : vector<2x32xf32> to vector<1x2x32xf32>
    tpu.vector_store %arg10[%c2_21, %c0_22, %c0_23], %29 {strides = array<i32>} : memref<4x2x32xf32, #tpu.memory_space<vmem>>, vector<1x2x32xf32>,
    %c3 = arith.constant 3 : index
    %c0_24 = arith.constant 0 : index
    %c0_25 = arith.constant 0 : index
    %30 = vector.load %arg2[%c3, %c0_24, %c0_25] : memref<4x2x4xf32, #tpu.memory_space<vmem>>, vector<1x2x4xf32>
    %31 = vector.shape_cast %30 : vector<1x2x4xf32> to vector<2x4xf32>
    %cst_26 = arith.constant dense<0.000000e+00> : vector<2x32xf32>
    %32 = tpu.matmul %31, %3, %cst_26 {dimension_numbers = #tpu.dot_dimension_numbers<[1], [0], [0], [1], [0, 0, 1, 1], [], []>} : vector<2x4xf32>, vector<4x32xf32>, vector<2x32xf32> -> vector<2x32xf32>
    %33 = vector.broadcast %5 : vector<1x32xf32> to vector<2x32xf32>
    %34 = arith.addf %32, %33 : vector<2x32xf32>
    %c3_27 = arith.constant 3 : index
    %c0_28 = arith.constant 0 : index
    %c0_29 = arith.constant 0 : index
    %35 = vector.load %arg10[%c3_27, %c0_28, %c0_29] : memref<4x2x32xf32, #tpu.memory_space<vmem>>, vector<1x2x32xf32>
    %36 = vector.shape_cast %35 : vector<1x2x32xf32> to vector<2x32xf32>
    %37 = vector.shape_cast %34 : vector<2x32xf32> to vector<1x2x32xf32>
    tpu.vector_store %arg10[%c3_27, %c0_28, %c0_29], %37 {strides = array<i32>} : memref<4x2x32xf32, #tpu.memory_space<vmem>>, vector<1x2x32xf32>,
    %c0_30 = arith.constant 0 : index
    %c0_31 = arith.constant 0 : index
    %38 = vector.load %arg9[%c0_30, %c0_31] : memref<2x32xf32, #tpu.memory_space<vmem>>, vector<2x32xf32>
    %c0_i32_32 = arith.constant 0 : i32
    %39 = arith.index_cast %c0_i32_32 : i32 to index
    %c0_33 = arith.constant 0 : index
    %c0_34 = arith.constant 0 : index
    %40 = vector.load %arg10[%39, %c0_33, %c0_34] : memref<4x2x32xf32, #tpu.memory_space<vmem>>, vector<1x2x32xf32>
    %41 = vector.shape_cast %40 : vector<1x2x32xf32> to vector<2x32xf32>
    %cst_35 = arith.constant dense<0.000000e+00> : vector<2x32xf32>
    %42 = tpu.matmul %38, %4, %cst_35 {dimension_numbers = #tpu.dot_dimension_numbers<[1], [0], [0], [1], [0, 0, 1, 1], [], []>} : vector<2x32xf32>, vector<32x32xf32>, vector<2x32xf32> -> vector<2x32xf32>
    %43 = arith.addf %41, %42 : vector<2x32xf32>
    %44 = math.tanh %43 : vector<2x32xf32>
    %c1_i32 = arith.constant 1 : i32
    %45 = arith.index_cast %c1_i32 : i32 to index
    %c0_36 = arith.constant 0 : index
    %c0_37 = arith.constant 0 : index
    %46 = vector.load %arg10[%45, %c0_36, %c0_37] : memref<4x2x32xf32, #tpu.memory_space<vmem>>, vector<1x2x32xf32>
    %47 = vector.shape_cast %46 : vector<1x2x32xf32> to vector<2x32xf32>
    %cst_38 = arith.constant dense<0.000000e+00> : vector<2x32xf32>
    %48 = tpu.matmul %44, %4, %cst_38 {dimension_numbers = #tpu.dot_dimension_numbers<[1], [0], [0], [1], [0, 0, 1, 1], [], []>} : vector<2x32xf32>, vector<32x32xf32>, vector<2x32xf32> -> vector<2x32xf32>
    %49 = arith.addf %47, %48 : vector<2x32xf32>
    %50 = math.tanh %49 : vector<2x32xf32>
    %c2_i32 = arith.constant 2 : i32
    %51 = arith.index_cast %c2_i32 : i32 to index
    %c0_39 = arith.constant 0 : index
    %c0_40 = arith.constant 0 : index
    %52 = vector.load %arg10[%51, %c0_39, %c0_40] : memref<4x2x32xf32, #tpu.memory_space<vmem>>, vector<1x2x32xf32>
    %53 = vector.shape_cast %52 : vector<1x2x32xf32> to vector<2x32xf32>
    %cst_41 = arith.constant dense<0.000000e+00> : vector<2x32xf32>
    %54 = tpu.matmul %50, %4, %cst_41 {dimension_numbers = #tpu.dot_dimension_numbers<[1], [0], [0], [1], [0, 0, 1, 1], [], []>} : vector<2x32xf32>, vector<32x32xf32>, vector<2x32xf32> -> vector<2x32xf32>
    %55 = arith.addf %53, %54 : vector<2x32xf32>
    %56 = math.tanh %55 : vector<2x32xf32>
    %c3_i32 = arith.constant 3 : i32
    %57 = arith.index_cast %c3_i32 : i32 to index
    %c0_42 = arith.constant 0 : index
    %c0_43 = arith.constant 0 : index
    %58 = vector.load %arg10[%57, %c0_42, %c0_43] : memref<4x2x32xf32, #tpu.memory_space<vmem>>, vector<1x2x32xf32>
    %59 = vector.shape_cast %58 : vector<1x2x32xf32> to vector<2x32xf32>
    %cst_44 = arith.constant dense<0.000000e+00> : vector<2x32xf32>
    %60 = tpu.matmul %56, %4, %cst_44 {dimension_numbers = #tpu.dot_dimension_numbers<[1], [0], [0], [1], [0, 0, 1, 1], [], []>} : vector<2x32xf32>, vector<32x32xf32>, vector<2x32xf32> -> vector<2x32xf32>
    %61 = arith.addf %59, %60 : vector<2x32xf32>
    %62 = math.tanh %61 : vector<2x32xf32>
    %c4_i32 = arith.constant 4 : i32
    %c0_45 = arith.constant 0 : index
    %c0_46 = arith.constant 0 : index
    %63 = vector.load %arg9[%c0_45, %c0_46] : memref<2x32xf32, #tpu.memory_space<vmem>>, vector<2x32xf32>
    tpu.vector_store %arg9[%c0_45, %c0_46], %62 {strides = array<i32>} : memref<2x32xf32, #tpu.memory_space<vmem>>, vector<2x32xf32>,
    %c1_i32_47 = arith.constant 1 : i32
    %64 = arith.cmpi eq, %arg1, %c1_i32_47 : i32
    %65 = arith.extui %64 : i1 to i32
    %c0_i32_48 = arith.constant 0 : i32
    %66 = arith.cmpi ne, %65, %c0_i32_48 : i32
    scf.if %66 {
      %c0_49 = arith.constant 0 : index
      %c0_50 = arith.constant 0 : index
      %67 = vector.load %arg6[%c0_49, %c0_50] : memref<32x1xf32, #tpu.memory_space<vmem>>, vector<32x1xf32>
      %cst_51 = arith.constant dense<0.000000e+00> : vector<2x1xf32>
      %68 = tpu.matmul %62, %67, %cst_51 {dimension_numbers = #tpu.dot_dimension_numbers<[1], [0], [0], [1], [0, 0, 1, 1], [], []>} : vector<2x32xf32>, vector<32x1xf32>, vector<2x1xf32> -> vector<2x1xf32>
      %c0_52 = arith.constant 0 : index
      %c0_53 = arith.constant 0 : index
      %69 = vector.load %arg7[%c0_52, %c0_53] : memref<1x1xf32, #tpu.memory_space<vmem>>, vector<1x1xf32>
      %70 = vector.broadcast %69 : vector<1x1xf32> to vector<2x1xf32>
      %71 = arith.addf %68, %70 : vector<2x1xf32>
      %72 = arith.negf %71 : vector<2x1xf32>
      %73 = math.exp %72 : vector<2x1xf32>
      %cst_54 = arith.constant 1.000000e+00 : f32
      %74 = vector.broadcast %cst_54 : f32 to vector<2x1xf32>
      %75 = arith.addf %74, %73 : vector<2x1xf32>
      %76 = arith.divf %74, %75 : vector<2x1xf32>
      %c0_55 = arith.constant 0 : index
      %c0_56 = arith.constant 0 : index
      %77 = vector.load %arg8[%c0_55, %c0_56] : memref<2x1xf32, #tpu.memory_space<vmem>>, vector<2x1xf32>
      tpu.vector_store %arg8[%c0_55, %c0_56], %76 {strides = array<i32>} : memref<2x1xf32, #tpu.memory_space<vmem>>, vector<2x1xf32>,
    } else {
    }
    return
  }
  func.func @transform_0(%arg0: i32, %arg1: i32) -> (i32, i32, i32) {
    %c0_i32 = arith.constant 0 : i32
    %c0_i32_0 = arith.constant 0 : i32
    return %arg1, %arg0, %c0_i32 : i32, i32, i32
  }
  func.func @transform_1(%arg0: i32, %arg1: i32) -> (i32, i32) {
    %c0_i32 = arith.constant 0 : i32
    %c0_i32_0 = arith.constant 0 : i32
    %c0_i32_1 = arith.constant 0 : i32
    return %c0_i32, %c0_i32_0 : i32, i32
  }
  func.func @transform_2(%arg0: i32, %arg1: i32) -> (i32, i32) {
    %c0_i32 = arith.constant 0 : i32
    %c0_i32_0 = arith.constant 0 : i32
    %c0_i32_1 = arith.constant 0 : i32
    return %c0_i32, %c0_i32_0 : i32, i32
  }
  func.func @transform_3(%arg0: i32, %arg1: i32) -> (i32, i32) {
    %c0_i32 = arith.constant 0 : i32
    %c0_i32_0 = arith.constant 0 : i32
    %c0_i32_1 = arith.constant 0 : i32
    return %c0_i32, %c0_i32_0 : i32, i32
  }
  func.func @transform_4(%arg0: i32, %arg1: i32) -> (i32, i32) {
    %c0_i32 = arith.constant 0 : i32
    %c0_i32_0 = arith.constant 0 : i32
    %c0_i32_1 = arith.constant 0 : i32
    return %c0_i32, %c0_i32_0 : i32, i32
  }
  func.func @transform_5(%arg0: i32, %arg1: i32) -> (i32, i32) {
    %c0_i32 = arith.constant 0 : i32
    %c0_i32_0 = arith.constant 0 : i32
    %c0_i32_1 = arith.constant 0 : i32
    return %c0_i32, %c0_i32_0 : i32, i32
  }
  func.func @transform_6(%arg0: i32, %arg1: i32) -> (i32, i32) {
    %c0_i32 = arith.constant 0 : i32
    %c0_i32_0 = arith.constant 0 : i32
    return %arg0, %c0_i32 : i32, i32
  }
}

</mosaic_0001>

<bundles_post_ra>
// kernel: tpu_custom_call.1
= control target key start
LH: loop header
LB: loop body
LE: loop exit
PB: predicated region body
PF: predicated region fallthrough
CT: control target
= control target key end

     0   :  { %s1318_s23 = smov 0   ;;  %s1320_s24 = smov 0   ;;  %s1446_s0 = inlined_call_operand.vmem [shape: f32[8,2,4], index: 0, kind: input, shape index: {}]   ;;  %s1447_s1 = inlined_call_operand.vmem [shape: f32[4,32], index: 1, kind: input, shape index: {}]   ;;  %s1448_s2 = inlined_call_operand.vmem [shape: f32[32,32], index: 2, kind: input, shape index: {}]   ;;  %s1449_s3 = inlined_call_operand.vmem [shape: f32[1,32], index: 3, kind: input, shape index: {}]   ;;  %s1450_s4 = inlined_call_operand.vmem [shape: f32[32,1], index: 4, kind: input, shape index: {}]   ;;  %s1451_s5 = inlined_call_operand.<no memory space> [shape: f32[1,1], index: 5, kind: input, shape index: {}]   ;;  %s1452_s6 = inlined_call_operand.vmem [shape: f32[2,1], index: 6, kind: output, shape index: {}]  }
   0x1   :  { %v11_v0 = vstv %s1451_s5  ;;  %s1322_s25 = smov 0  }
   0x2   :  { %12 = vst [vmem:[#allocation4] sm:$0x1] %v11_v0 }
   0x3 LB: > { %s27_s5 = sadd.s32 1, %s1269_s24  ;;  %p1075_p0 = scmp.ge.s32.totalorder %s1273_s25, 1  ;;  %s1273_s25 = sphi %s1322_s25, %s18_s25   ;;  %s1269_s24 = sphi %s1320_s24, %s1454_s24   ;;  %s1265_s23 = sphi %s1318_s23, %s1453_s23  }
   0x4   : > { %p28_p1 = scmp.ge.s32.totalorder %s27_s5, 2  ;;  %p232_p2 = scmp.lt.s32.totalorder %s1273_s25, 3 }
   0x6   : > { %s1456_s5 = smov (%p28_p1, %s27_s5), 0  ;;  %p233_p3 = pnand %p1075_p0, %p232_p2 }
   0x7   : > { %s1076_s26 = sshll.u32 (!%p233_p3), %s1265_s23, 2  ;;  %p1078_p5 = scmp.ne.s32.totalorder (!%p233_p3), %s1265_s23, 0 }
   0x8   : > { %236 = sbr.rel (%p233_p3) target bundleno = 1109 (0x455), region = 44  ;;  %p265_p4 = scmp.lt.s32.totalorder (!%p233_p3), %s1076_s26, 7 }
   0xd   : > { %s1458_s26 = smov (!%p265_p4, %s1076_s26), 7  ;;  %280 = sbr.rel (%p1078_p5) target bundleno = 20 (0x14), region = 48 }
   0xe   : > { %s1077_s27 = sshll.u32 %s1458_s26, 1 }
   0xf   : > { %s1342_s30 = scalar_lea.vmem %s1446_s0, %s1077_s27 }
  0x12   : > { %vm281_vm0 = vcmask 254976   ;;  %v1275_v1 = vmov 0.0  }
  0x13   : > { %282 = vst.msk [vmem:[#allocation2] sm:$0x3] %vm281_vm0, %v1275_v1 }
  0x14 PF: > { %v283_v2 = vld [vmem:[%s1447_s1] sm:$0xf]  ;;  %vm300_vm1 = vcmask 1043456   ;;  %vm296_vm2 = vcmask 31744   ;;  %v1276_v3 = vmov 0.0   ;;  %vm1277_vm3 = vmmov 0  }
  0x15   : > { %1135 = vmatprep.subr.mxu0 %v1276_v3  ;;  %1137 = vmatprep.mubr.msk.f32.mxu0 %vm1277_vm3, %v1276_v3  ;;  %v289_v4 = vld [vmem:[%s1342_s30] sm:$0x3]  ;;  %v1085_v5 = vld [vmem:[%s1342_s30 + $0x4] sm:$0x3]  ;;  %v287_v6 = vld [vmem:[%s1448_s2 + $0x18] sm:$0xff]  ;;  %vm609_vm4 = vcmask 261120  }
  0x16   : > { %1136 = vmatpush3.msk.msra.mxu0 %vm300_vm1, %v283_v2  ;;  %1140 = vmatprep.subr.mxu1 %v1276_v3  ;;  %v286_v7 = vld [vmem:[%s1448_s2 + $0x10] sm:$0xff]  ;;  %v285_v8 = vld [vmem:[%s1448_s2 + $0x8] sm:$0xff]  ;;  %v284_v9 = vld [vmem:[%s1448_s2] sm:$0xff]  ;;  %vm374_vm5 = vcmask 254976   ;;  %p1095_p6 = scmp.ne.s32.totalorder %s1265_s23, 1 }
  0x17   : > { %1138 = vmatmul.mubr.msk.f32.vlgmr.msra.gmra.mxu0 %vm296_vm2, %v289_v4  ;;  %1145 = vmatprep.subr.mxu0 %v1276_v3  ;;  %v1082_v11 = vld [vmem:[%s1342_s30 + $0x2] sm:$0x3]  ;;  %v1088_v12 = vld [vmem:[%s1342_s30 + $0x6] sm:$0x3]  ;;  %v1079_v13 = vld [vmem:[%s1449_s3] ss:$0 sm:$0xff] }
  0x18   : > { %1146 = vmatpush3.msk.msra.mxu0 %vm300_vm1, %v283_v2  ;;  %1147 = vmatprep.mubr.msk.f32.mxu0 %vm1277_vm3, %v1276_v3 }
  0x19   : > { %1155 = vmatprep.subr.mxu0 %v1276_v3  ;;  %1141 = vmatpush3.msk.msra.mxu1 %vm300_vm1, %v283_v2 }
  0x1a   : > { %1142 = vmatprep.mubr.msk.f32.mxu1 %vm1277_vm3, %v1276_v3  ;;  %1150 = vmatprep.subr.mxu1 %v1276_v3  ;;  %v607_v10 = vld [vmem:[#allocation2] sm:$0x3] }
  0x1b   : > { %1148 = vmatmul.mubr.msk.f32.vlgmr.msra.gmra.mxu0 %vm296_vm2, %v1085_v5  ;;  %1143 = vmatmul.mubr.msk.f32.vlgmr.msra.gmra.mxu1 %vm296_vm2, %v1082_v11 }
  0x1c   : > { %1156 = vmatpush3.msra.mxu0 %v287_v6  ;;  %1163 = vmatprep.mubr.msk.f32.mxu0 %vm1277_vm3, %v1276_v3 }
  0x1d   : > { %1157 = vmatprep.subr.mxu0 %v1276_v3  ;;  %1151 = vmatpush3.msk.msra.mxu1 %vm300_vm1, %v283_v2 }
  0x1e   : > { %1158 = vmatpush3.msra.mxu0 %v286_v7  ;;  %1152 = vmatprep.mubr.msk.f32.mxu1 %vm1277_vm3, %v1276_v3 }
  0x1f   : > { %1159 = vmatprep.subr.mxu0 %v1276_v3  ;;  %1166 = vmatprep.subr.mxu1 %v1276_v3 }
  0x20   : > { %1160 = vmatpush3.msra.mxu0 %v285_v8  ;;  %1153 = vmatmul.mubr.msk.f32.vlgmr.msra.gmra.mxu1 %vm296_vm2, %v1088_v12 }
  0x21   : > { %1161 = vmatprep.subr.mxu0 %v1276_v3  ;;  %1167 = vmatpush3.msra.mxu1 %v287_v6 }
  0x22   : > { %1162 = vmatpush3.msra.mxu0 %v284_v9  ;;  %1174 = vmatprep.mubr.msk.f32.mxu1 %vm1277_vm3, %v1276_v3 }
  0x23   : > { %1164 = vmatmul.mubr.msk.f32.vlgmr.msra.gmra.mxu0 %vm609_vm4, %v607_v10  ;;  %1177 = vmatprep.subr.mxu0 %v1276_v3 }
  0x24   : > { %1178 = vmatpush3.msra.mxu0 %v287_v6  ;;  %1185 = vmatprep.mubr.msk.f32.mxu0 %vm1277_vm3, %v1276_v3 }
  0x25   : > { %1179 = vmatprep.subr.mxu0 %v1276_v3  ;;  %1168 = vmatprep.subr.mxu1 %v1276_v3 }
  0x26   : > { %1180 = vmatpush3.msra.mxu0 %v286_v7  ;;  %1169 = vmatpush3.msra.mxu1 %v286_v7 }
  0x27   : > { %1181 = vmatprep.subr.mxu0 %v1276_v3  ;;  %1170 = vmatprep.subr.mxu1 %v1276_v3 }
  0x28   : > { %1182 = vmatpush3.msra.mxu0 %v285_v8  ;;  %1171 = vmatpush3.msra.mxu1 %v285_v8 }
  0x29   : > { %1183 = vmatprep.subr.mxu0 %v1276_v3  ;;  %1172 = vmatprep.subr.mxu1 %v1276_v3 }
  0x2a   : > { %1184 = vmatpush3.msra.mxu0 %v284_v9  ;;  %1173 = vmatpush3.msra.mxu1 %v284_v9 }
  0x2b   : > { %1188 = vmatprep.subr.mxu1 %v1276_v3 }
  0xd7   : > { %v370_v14 = vpop.f32.mrf.mxu0 }
  0xd8   : > { %v371_v15 = vadd.f32 %v1079_v13, %v370_v14 }
  0xd9   : > { %v1139_v16 = vpop.f32.mrf.mxu0 }
  0xda   : > { %375 = vst.msk [vmem:[#allocation3] sm:$0x3] %vm374_vm5, %v371_v15 }
  0xdb   : > { %v524_v17 = vpop.f32.mrf.mxu0  ;;  %v447_v25 = vpop.f32.mrf.mxu1 }
  0xdc   : > { %v525_v18 = vadd.f32 %v1079_v13, %v524_v17  ;;  %v448_v26 = vadd.f32 %v1079_v13, %v447_v25 }
  0xdd   : > { %v1149_v19 = vpop.f32.mrf.mxu0  ;;  %v1144_v27 = vpop.f32.mrf.mxu1 }
  0xde   : > { %529 = vst.msk [vmem:[#allocation3 + $0x4] sm:$0x3] %vm374_vm5, %v525_v18  ;;  %452 = vst.msk [vmem:[#allocation3 + $0x2] sm:$0x3] %vm374_vm5, %v448_v26 }
  0xe0   : > { %v601_v28 = vpop.f32.mrf.mxu1 }
  0xe1   : > { %v608_v20 = vld [vmem:[#allocation3] sm:$0x3]  ;;  %v602_v29 = vadd.f32 %v1079_v13, %v601_v28 }
  0xe2   : > { %v1154_v30 = vpop.f32.mrf.mxu1 }
  0xe3   : > { %v679_v21 = vpop.f32.mrf.mxu0  ;;  %606 = vst.msk [vmem:[#allocation3 + $0x6] sm:$0x3] %vm374_vm5, %v602_v29 }
  0xe4   : > { %v683_v22 = vadd.f32 %v679_v21, %v608_v20 }
  0xe5   : > { %v1165_v23 = vpop.f32.mrf.mxu0  ;;  %v685_v31 = vld [vmem:[#allocation3 + $0x2] sm:$0x3]  ;;  %v761_v36 = vld [vmem:[#allocation3 + $0x4] sm:$0x3] }
  0xe6   : > { %1239 = vtanh.f32 %v683_v22 }
  0xea   : > { %v837_v41 = vld [vmem:[#allocation3 + $0x6] sm:$0x3] }
  0xf3   : > { %v1240_v24 = vpop.eup %1239 }
  0xf4   : > { %1175 = vmatmul.mubr.msk.f32.vlgmr.msra.gmra.mxu1 %vm609_vm4, %v1240_v24 }
  0xf5   : > { %1189 = vmatpush3.msra.mxu1 %v287_v6  ;;  %1196 = vmatprep.mubr.msk.f32.mxu1 %vm1277_vm3, %v1276_v3 }
  0xf6   : > { %1190 = vmatprep.subr.mxu1 %v1276_v3 }
  0xf7   : > { %1191 = vmatpush3.msra.mxu1 %v286_v7 }
  0xf8   : > { %1192 = vmatprep.subr.mxu1 %v1276_v3 }
  0xf9   : > { %1193 = vmatpush3.msra.mxu1 %v285_v8 }
  0xfa   : > { %1194 = vmatprep.subr.mxu1 %v1276_v3 }
  0xfb   : > { %1195 = vmatpush3.msra.mxu1 %v284_v9 }
 0x1b4   : > { %v755_v32 = vpop.f32.mrf.mxu1 }
 0x1b5   : > { %v759_v33 = vadd.f32 %v755_v32, %v685_v31 }
 0x1b6   : > { %v1176_v34 = vpop.f32.mrf.mxu1 }
 0x1b7   : > { %1241 = vtanh.f32 %v759_v33 }
 0x1c4   : > { %v1242_v35 = vpop.eup %1241 }
 0x1c5   : > { %1186 = vmatmul.mubr.msk.f32.vlgmr.msra.gmra.mxu0 %vm609_vm4, %v1242_v35 }
 0x285   : > { %v831_v37 = vpop.f32.mrf.mxu0 }
 0x286   : > { %v835_v38 = vadd.f32 %v831_v37, %v761_v36 }
 0x287   : > { %v1187_v39 = vpop.f32.mrf.mxu0 }
 0x288   : > { %1243 = vtanh.f32 %v835_v38 }
 0x295   : > { %v1244_v40 = vpop.eup %1243 }
 0x296   : > { %1197 = vmatmul.mubr.msk.f32.vlgmr.msra.gmra.mxu1 %vm609_vm4, %v1244_v40 }
 0x356   : > { %v907_v42 = vpop.f32.mrf.mxu1 }
 0x357   : > { %v911_v43 = vadd.f32 %v907_v42, %v837_v41 }
 0x358   : > { %v1198_v44 = vpop.f32.mrf.mxu1 }
 0x359   : > { %1245 = vtanh.f32 %v911_v43 }
 0x363   : > { %917 = sbr.rel (%p1095_p6) target bundleno = 1109 (0x455), region = 52 }
 0x366   : > { %v1246_v45 = vpop.eup %1245 }
 0x367   : > { %913 = vst.msk [vmem:[#allocation2] sm:$0x3] %vm374_vm5, %v1246_v45 }
 0x368   : > { %v921_v46 = vld [vmem:[%s1450_s4 + $0x18] sm:$0xff]  ;;  %v1278_v47 = vmov 0.0   ;;  %v920_v48 = vld [vmem:[%s1450_s4 + $0x10] sm:$0xff]  ;;  %vm1279_vm6 = vmmov 0   ;;  %v919_v49 = vld [vmem:[%s1450_s4 + $0x8] sm:$0xff]  ;;  %vm1008_vm7 = vcmask 1024  }
 0x369   : > { %1199 = vmatprep.subr.mxu0 %v1278_v47  ;;  %1207 = vmatprep.mubr.msk.f32.mxu0 %vm1279_vm6, %v1278_v47  ;;  %v918_v50 = vld [vmem:[%s1450_s4] sm:$0xff]  ;;  %v1096_v51 = vld [vmem:[#allocation4] ss:$0 sm:$0xff] }
 0x36a   : > { %1200 = vmatpush3.msra.mxu0 %v921_v46 }
 0x36b   : > { %1201 = vmatprep.subr.mxu0 %v1278_v47 }
 0x36c   : > { %1202 = vmatpush3.msra.mxu0 %v920_v48 }
 0x36d   : > { %1203 = vmatprep.subr.mxu0 %v1278_v47 }
 0x36e   : > { %1204 = vmatpush3.msra.mxu0 %v919_v49 }
 0x36f   : > { %1205 = vmatprep.subr.mxu0 %v1278_v47 }
 0x370   : > { %1206 = vmatpush3.msra.mxu0 %v918_v50 }
 0x371   : > { %1208 = vmatmul.mubr.msk.f32.vlgmr.msra.gmra.mxu0 %vm609_vm4, %v1246_v45 }
 0x431   : > { %v998_v52 = vpop.f32.mrf.mxu0 }
 0x432   : > { %v999_v53 = vadd.f32 %v1096_v51, %v998_v52 }
 0x433   : > { %v1209_v54 = vpop.f32.mrf.mxu0 }
 0x434   : > { %v1098_v55 = vmul.f32 -1.442695, %v999_v53 }
 0x436   : > { %1247 = vpow2.f32 %v1098_v55 }
 0x443   : > { %v1248_v56 = vpop.eup %1247 }
 0x444   : > { %v1005_v57 = vadd.f32 1.0, %v1248_v56 }
 0x446   : > { %1249 = vrcp.f32 %v1005_v57 }
 0x453   : > { %v1250_v58 = vpop.eup %1249 }
 0x454   : > { %1009 = vst.msk [vmem:[%s1452_s6] sm:$0x3] %vm1008_vm7, %v1250_v58 }
 0x455 PF: > { %s18_s25 = sadd.s32 1, %s1273_s25   ;;  %s1453_s23 = smov %s1269_s24 }
 0x456   : > { %p15_p7 = scmp.ge.s32.totalorder %s18_s25, 4   ;;  %s1454_s24 = smov %s1456_s5 }
 0x458   :  { %17 = sbr.rel (!%p15_p7) target bundleno = 3 (0x3), region = 88 }

</bundles_post_ra>
